<compile_context>
chip_gen: v5e
topology: v5e:2x2
jax: 0.10.0
libtpu: 0.0.40
codegen_flags: <defaults>
</compile_context>

<pallas_src>
from functools import partial

import jax
import jax.numpy as jnp
from jax.experimental import pallas as pl
from jax.experimental.pallas import tpu as pltpu

EPSILON = 0.1          # matches module default
REDUCTION = "mean"     # matches module default

_MIB = 1024 * 1024


def _round_up(x, m):
    return ((x + m - 1) // m) * m


def _physical_vmem_bytes():
    """Best-effort physical VMEM size; conservative (v7x per-TC) default."""
    phys = 64 * _MIB
    try:
        info = pltpu.get_tpu_info()
        v = int(getattr(info, "vmem_capacity_bytes", 0) or 0)
        if v >= 16 * _MIB:
            phys = v
    except Exception:
        pass
    return phys


def _detect_num_tensorcores():
    """Best-effort TensorCore count per device (2 on v7x, 1 on v5e/v6e)."""
    try:
        d = jax.devices()[0]
        for attr in ("num_cores", "core_count"):
            v = getattr(d, attr, None)
            if isinstance(v, int) and 1 <= v <= 8:
                return v
    except Exception:
        pass
    return 1


def _label_smoothing_ce_kernel(preds_ref, target_ref, out_ref, *,
                               b_total, num_classes, tiles_per_shard):
    # preds_ref:  (TB, C) model-dtype tile in VMEM
    # target_ref: (TB, 1) int32 tile in VMEM
    # out_ref:    (1, 8, 128) f32 per-shard partial-sum block, resident across
    #             the row-tile axis; lane 0 = sum(-sum log), lane 1 = sum(-nll)
    s = pl.program_id(0)          # shard (parallel across TensorCores)
    i = pl.program_id(1)          # row tile within the shard (accumulated)

    @pl.when(i == 0)
    def _init():
        out_ref[...] = jnp.zeros_like(out_ref)

    preds = preds_ref[...].astype(jnp.float32)            # (TB, C) f32
    tgt = target_ref[...]                                  # (TB, 1) int32
    tb, c = preds.shape

    # Numerically stable row log-sum-exp.
    m = jnp.max(preds, axis=-1, keepdims=True)                              # (TB,1)
    lse = jnp.log(jnp.sum(jnp.exp(preds - m), axis=-1, keepdims=True)) + m  # (TB,1)

    sum_preds = jnp.sum(preds, axis=-1, keepdims=True)                      # (TB,1)
    cls_idx = jax.lax.broadcasted_iota(jnp.int32, (tb, c), 1)
    picked = jnp.sum(jnp.where(cls_idx == tgt, preds, 0.0),
                     axis=-1, keepdims=True)                                # (TB,1)

    # Global (unclamped) tile index -> mask rows past the real batch.  The
    # index_map clamps the DMA to the last valid tile, so extra rows here are
    # either OOB tails or duplicated data; jnp.where keeps any inf/NaN they
    # produce out of the reductions.
    g = s * tiles_per_shard + i
    row = g * tb + jax.lax.broadcasted_iota(jnp.int32, (tb, 1), 0)
    valid = row < b_total

    smooth_part = jnp.sum(jnp.where(valid, num_classes * lse - sum_preds, 0.0))
    nll_part = jnp.sum(jnp.where(valid, lse - picked, 0.0))

    # Accumulate the two raw partial sums into lanes 0/1 of sublane 0 of this
    # shard's output block (one vreg of VALU work per step).
    sub_idx = jax.lax.broadcasted_iota(jnp.int32, out_ref.shape, 1)
    lane_idx = jax.lax.broadcasted_iota(jnp.int32, out_ref.shape, 2)
    contrib = jnp.where((sub_idx == 0) & (lane_idx == 0), smooth_part,
                        jnp.where((sub_idx == 0) & (lane_idx == 1), nll_part,
                                  0.0))
    out_ref[...] = out_ref[...] + contrib


def label_smoothing_ce(preds, target, epsilon=EPSILON, reduction=REDUCTION,
                       tile_rows=None, num_shards=None):
    """preds: (B, C) float (f32 or bf16), target: (B,) int -> scalar f32 loss."""
    if reduction not in ("mean", "sum"):
        # TODO(synk): reduction='none' (unreduced per-sample loss) not implemented.
        raise NotImplementedError("reduction must be 'mean' or 'sum'")

    B, C = preds.shape
    dtype_bytes = jnp.dtype(preds.dtype).itemsize
    sub = max(8, 32 // max(dtype_bytes, 1))      # sublane multiple: f32 8, bf16 16

    phys_vmem = _physical_vmem_bytes()
    total_budget = min(phys_vmem // 2, 40 * _MIB)   # working-set target per step

    if tile_rows is None:
        # Per row: 2x double-buffered input bytes + ~2.5 live (TB, C) f32
        # temporaries (cast + exp) produced in-kernel.  No artificial row cap:
        # multi-MiB tiles amortize the ~0.35us/step overhead -> HBM roofline.
        per_row_bytes = C * (2 * dtype_bytes + 10) + 64
        TB = max(sub, (total_budget // per_row_bytes) // sub * sub)
    else:
        TB = max(sub, _round_up(int(tile_rows), sub))
    TB = min(TB, _round_up(B, sub))

    num_tiles = -(-B // TB)
    if num_shards is None:
        num_shards = _detect_num_tensorcores()
    num_shards = max(1, min(int(num_shards), num_tiles))
    tiles_per_shard = -(-num_tiles // num_shards)
    grid = (num_shards, tiles_per_shard)
    last_tile = num_tiles - 1

    def preds_index(s, i):
        return (jnp.minimum(s * tiles_per_shard + i, last_tile), 0)

    def target_index(s, i):
        return (jnp.minimum(s * tiles_per_shard + i, last_tile), 0)

    def out_index(s, i):
        return (s, 0, 0)

    target_2d = target.astype(jnp.int32).reshape(B, 1)

    kernel = partial(_label_smoothing_ce_kernel,
                     b_total=B, num_classes=C, tiles_per_shard=tiles_per_shard)

    vmem_limit = int(max(32 * _MIB,
                         min(phys_vmem - 16 * _MIB, total_budget + 24 * _MIB)))

    cost = pl.CostEstimate(
        flops=6 * B * C,
        transcendentals=B * C + B,
        bytes_accessed=B * C * dtype_bytes + B * 4 + num_shards * 8 * 128 * 4,
    )

    partials = pl.pallas_call(
        kernel,
        out_shape=jax.ShapeDtypeStruct((num_shards, 8, 128), jnp.float32),
        grid_spec=pltpu.PrefetchScalarGridSpec(
            num_scalar_prefetch=0,
            grid=grid,
            in_specs=[
                pl.BlockSpec((TB, C), preds_index),
                pl.BlockSpec((TB, 1), target_index),
            ],
            out_specs=pl.BlockSpec((1, 8, 128), out_index),
        ),
        compiler_params=pltpu.CompilerParams(
            dimension_semantics=("parallel", "arbitrary"),
            vmem_limit_bytes=vmem_limit,
        ),
        cost_estimate=cost,
    )(preds, target_2d)

    smooth_sum = jnp.sum(partials[:, 0, 0])
    nll_sum = jnp.sum(partials[:, 0, 1])
    scale = (1.0 / B) if reduction == "mean" else 1.0
    # Fold epsilon/num_classes and (1 - epsilon) into Python-float constants.
    return (float(epsilon) / C) * (smooth_sum * scale) \
        + (1.0 - float(epsilon)) * (nll_sum * scale)


def _reference(preds, target, epsilon=EPSILON, reduction=REDUCTION):
    # Pure-JAX mirror of the PyTorch forward.
    n = preds.shape[-1]
    log_preds = jax.nn.log_softmax(preds.astype(jnp.float32), axis=-1)
    loss = -jnp.sum(log_preds, axis=-1)
    nll = -jnp.take_along_axis(log_preds, target[:, None].astype(jnp.int32),
                               axis=-1)[:, 0]
    if reduction == "mean":
        loss, nll = jnp.mean(loss), jnp.mean(nll)
    else:
        loss, nll = jnp.sum(loss), jnp.sum(nll)
    return epsilon * (loss / n) + (1.0 - epsilon) * nll


if __name__ == "__main__":
    key = jax.random.PRNGKey(0)
    k1, k2, k3, k4, k5, k6 = jax.random.split(key, 6)

    # Case 1: small, single tile (B a multiple of 8, full C on the lanes).
    B, C = 8, 32
    preds = jax.random.normal(k1, (B, C), dtype=jnp.float32)
    target = jax.random.randint(k2, (B,), 0, C, dtype=jnp.int32)
    out = jax.block_until_ready(label_smoothing_ce(preds, target))
    ref = _reference(preds, target)
    assert jnp.allclose(out, ref, atol=1e-5, rtol=1e-5), (out, ref)
    out_s = jax.block_until_ready(label_smoothing_ce(preds, target, reduction="sum"))
    ref_s = _reference(preds, target, reduction="sum")
    assert jnp.allclose(out_s, ref_s, atol=1e-4, rtol=1e-5), (out_s, ref_s)

    # Case 2: ragged batch, multi-tile grid, explicit 2-way shard axis
    # (exercises tail masking without padding, the clamped index_map for the
    # uneven shard, and per-shard partial accumulation).
    B2, C2 = 20, 32
    preds2 = jax.random.normal(k3, (B2, C2), dtype=jnp.float32)
    target2 = jax.random.randint(k4, (B2,), 0, C2, dtype=jnp.int32)
    out2 = jax.block_until_ready(
        label_smoothing_ce(preds2, target2, tile_rows=8, num_shards=2))
    ref2 = _reference(preds2, target2)
    assert jnp.allclose(out2, ref2, atol=1e-5, rtol=1e-5), (out2, ref2)

    # Case 3: bf16 on the HBM wire, auto tile sizing.
    B3, C3 = 32, 48
    preds3 = jax.random.normal(k5, (B3, C3), dtype=jnp.float32).astype(jnp.bfloat16)
    target3 = jax.random.randint(k6, (B3,), 0, C3, dtype=jnp.int32)
    out3 = jax.block_until_ready(label_smoothing_ce(preds3, target3))
    ref3 = _reference(preds3, target3)
    assert jnp.allclose(out3, ref3, atol=1e-4, rtol=1e-4), (out3, ref3)

    print("KERNEL_OK")
</pallas_src>

<mosaic_0001>
module attributes {stable_mosaic.version = 11 : i64} {
  func.func @_label_smoothing_ce_kernel(%arg0: i32, %arg1: i32, %arg2: memref<8x32xf32, #tpu.memory_space<vmem>>, %arg3: memref<8x1xi32, #tpu.memory_space<vmem>>, %arg4: memref<1x8x128xf32, #tpu.memory_space<vmem>>) attributes {dimension_semantics = [#tpu.dimension_semantics<parallel>, #tpu.dimension_semantics<arbitrary>], iteration_bounds = array<i64: 1, 1>, scalar_prefetch = 0 : i64, scratch_operands = 0 : i64, tpu.core_type = #tpu.core_type<tc>, window_params = [{transform_indices = @transform_0, window_bounds = array<i64: 8, 32>}, {transform_indices = @transform_1, window_bounds = array<i64: 8, 1>}, {transform_indices = @transform_2, window_bounds = array<i64: 1, 8, 128>}]} {
    %c0_i32 = arith.constant 0 : i32
    %0 = arith.cmpi eq, %arg1, %c0_i32 : i32
    %1 = arith.extui %0 : i1 to i32
    %c0_i32_0 = arith.constant 0 : i32
    %2 = arith.cmpi ne, %1, %c0_i32_0 : i32
    scf.if %2 {
      %cst_25 = arith.constant 0.000000e+00 : f32
      %67 = vector.broadcast %cst_25 : f32 to vector<1x8x128xf32>
      %c0_26 = arith.constant 0 : index
      %c0_27 = arith.constant 0 : index
      %c0_28 = arith.constant 0 : index
      %68 = vector.load %arg4[%c0_26, %c0_27, %c0_28] : memref<1x8x128xf32, #tpu.memory_space<vmem>>, vector<1x8x128xf32>
      tpu.vector_store %arg4[%c0_26, %c0_27, %c0_28], %67 {strides = array<i32>} : memref<1x8x128xf32, #tpu.memory_space<vmem>>, vector<1x8x128xf32>,
    } else {
    }
    %c0 = arith.constant 0 : index
    %c0_1 = arith.constant 0 : index
    %3 = vector.load %arg2[%c0, %c0_1] : memref<8x32xf32, #tpu.memory_space<vmem>>, vector<8x32xf32>
    %c0_2 = arith.constant 0 : index
    %c0_3 = arith.constant 0 : index
    %4 = vector.load %arg3[%c0_2, %c0_3] : memref<8x1xi32, #tpu.memory_space<vmem>>, vector<8x1xi32>
    %cst = arith.constant dense<0xFF800000> : vector<8xf32>
    %5 = vector.multi_reduction <maximumf>, %3, %cst [1] : vector<8x32xf32> to vector<8xf32>
    %6 = vector.shape_cast %5 : vector<8xf32> to vector<8x1xf32>
    %7 = vector.broadcast %6 : vector<8x1xf32> to vector<8x32xf32>
    %8 = arith.subf %3, %7 : vector<8x32xf32>
    %9 = math.exp %8 : vector<8x32xf32>
    %cst_4 = arith.constant dense<0.000000e+00> : vector<8xf32>
    %10 = vector.multi_reduction <add>, %9, %cst_4 [1] : vector<8x32xf32> to vector<8xf32>
    %11 = vector.shape_cast %10 : vector<8xf32> to vector<8x1xf32>
    %12 = math.log %11 : vector<8x1xf32>
    %13 = arith.addf %12, %6 : vector<8x1xf32>
    %cst_5 = arith.constant dense<0.000000e+00> : vector<8xf32>
    %14 = vector.multi_reduction <add>, %3, %cst_5 [1] : vector<8x32xf32> to vector<8xf32>
    %15 = vector.shape_cast %14 : vector<8xf32> to vector<8x1xf32>
    %16 = tpu.iota {dimensions = array<i32: 1>} : vector<8x32xi32>
    %17 = vector.broadcast %4 : vector<8x1xi32> to vector<8x32xi32>
    %18 = arith.cmpi eq, %16, %17 : vector<8x32xi32>
    %cst_6 = arith.constant 0.000000e+00 : f32
    %19 = vector.broadcast %cst_6 : f32 to vector<8x32xf32>
    %20 = arith.select %18, %3, %19 : vector<8x32xi1>, vector<8x32xf32>
    %cst_7 = arith.constant dense<0.000000e+00> : vector<8xf32>
    %21 = vector.multi_reduction <add>, %20, %cst_7 [1] : vector<8x32xf32> to vector<8xf32>
    %22 = vector.shape_cast %21 : vector<8xf32> to vector<8x1xf32>
    %c1_i32 = arith.constant 1 : i32
    %23 = arith.muli %arg0, %c1_i32 : i32
    %24 = arith.addi %23, %arg1 : i32
    %c8_i32 = arith.constant 8 : i32
    %25 = arith.muli %24, %c8_i32 : i32
    %26 = tpu.iota {dimensions = array<i32: 0>} : vector<8x1xi32>
    %27 = vector.broadcast %25 : i32 to vector<8x1xi32>
    %28 = arith.addi %27, %26 : vector<8x1xi32>
    %c8_i32_8 = arith.constant 8 : i32
    %29 = vector.broadcast %c8_i32_8 : i32 to vector<8x1xi32>
    %30 = arith.cmpi slt, %28, %29 : vector<8x1xi32>
    %cst_9 = arith.constant 3.200000e+01 : f32
    %31 = vector.broadcast %cst_9 : f32 to vector<8x1xf32>
    %32 = arith.mulf %31, %13 : vector<8x1xf32>
    %33 = arith.subf %32, %15 : vector<8x1xf32>
    %cst_10 = arith.constant 0.000000e+00 : f32
    %34 = vector.broadcast %cst_10 : f32 to vector<8x1xf32>
    %35 = arith.select %30, %33, %34 : vector<8x1xi1>, vector<8x1xf32>
    %36 = vector.shape_cast %35 : vector<8x1xf32> to vector<1x8x1xf32>
    %cst_11 = arith.constant dense<0.000000e+00> : vector<1xf32>
    %37 = vector.multi_reduction <add>, %36, %cst_11 [1, 2] : vector<1x8x1xf32> to vector<1xf32>
    %38 = vector.shape_cast %37 : vector<1xf32> to vector<1x1x1xf32>
    %39 = vector.extract %38[0, 0, 0] : f32 from vector<1x1x1xf32>
    %40 = arith.subf %13, %22 : vector<8x1xf32>
    %cst_12 = arith.constant 0.000000e+00 : f32
    %41 = vector.broadcast %cst_12 : f32 to vector<8x1xf32>
    %42 = arith.select %30, %40, %41 : vector<8x1xi1>, vector<8x1xf32>
    %43 = vector.shape_cast %42 : vector<8x1xf32> to vector<1x8x1xf32>
    %cst_13 = arith.constant dense<0.000000e+00> : vector<1xf32>
    %44 = vector.multi_reduction <add>, %43, %cst_13 [1, 2] : vector<1x8x1xf32> to vector<1xf32>
    %45 = vector.shape_cast %44 : vector<1xf32> to vector<1x1x1xf32>
    %46 = vector.extract %45[0, 0, 0] : f32 from vector<1x1x1xf32>
    %47 = tpu.iota {dimensions = array<i32: 1>} : vector<1x8x128xi32>
    %48 = tpu.iota {dimensions = array<i32: 2>} : vector<1x8x128xi32>
    %c0_i32_14 = arith.constant 0 : i32
    %49 = vector.broadcast %c0_i32_14 : i32 to vector<1x8x128xi32>
    %50 = arith.cmpi eq, %47, %49 : vector<1x8x128xi32>
    %c0_i32_15 = arith.constant 0 : i32
    %51 = vector.broadcast %c0_i32_15 : i32 to vector<1x8x128xi32>
    %52 = arith.cmpi eq, %48, %51 : vector<1x8x128xi32>
    %53 = arith.andi %50, %52 : vector<1x8x128xi1>
    %c0_i32_16 = arith.constant 0 : i32
    %54 = vector.broadcast %c0_i32_16 : i32 to vector<1x8x128xi32>
    %55 = arith.cmpi eq, %47, %54 : vector<1x8x128xi32>
    %c1_i32_17 = arith.constant 1 : i32
    %56 = vector.broadcast %c1_i32_17 : i32 to vector<1x8x128xi32>
    %57 = arith.cmpi eq, %48, %56 : vector<1x8x128xi32>
    %58 = arith.andi %55, %57 : vector<1x8x128xi1>
    %cst_18 = arith.constant 0.000000e+00 : f32
    %59 = vector.broadcast %46 : f32 to vector<1x8x128xf32>
    %60 = vector.broadcast %cst_18 : f32 to vector<1x8x128xf32>
    %61 = arith.select %58, %59, %60 : vector<1x8x128xi1>, vector<1x8x128xf32>
    %62 = vector.broadcast %39 : f32 to vector<1x8x128xf32>
    %63 = arith.select %53, %62, %61 : vector<1x8x128xi1>, vector<1x8x128xf32>
    %c0_19 = arith.constant 0 : index
    %c0_20 = arith.constant 0 : index
    %c0_21 = arith.constant 0 : index
    %64 = vector.load %arg4[%c0_19, %c0_20, %c0_21] : memref<1x8x128xf32, #tpu.memory_space<vmem>>, vector<1x8x128xf32>
    %65 = arith.addf %64, %63 : vector<1x8x128xf32>
    %c0_22 = arith.constant 0 : index
    %c0_23 = arith.constant 0 : index
    %c0_24 = arith.constant 0 : index
    %66 = vector.load %arg4[%c0_22, %c0_23, %c0_24] : memref<1x8x128xf32, #tpu.memory_space<vmem>>, vector<1x8x128xf32>
    tpu.vector_store %arg4[%c0_22, %c0_23, %c0_24], %65 {strides = array<i32>} : memref<1x8x128xf32, #tpu.memory_space<vmem>>, vector<1x8x128xf32>,
    return
  }
  func.func @transform_0(%arg0: i32, %arg1: i32) -> (i32, i32) {
    %c1_i32 = arith.constant 1 : i32
    %0 = arith.muli %arg0, %c1_i32 : i32
    %1 = arith.addi %0, %arg1 : i32
    %c0_i32 = arith.constant 0 : i32
    %2 = arith.minsi %1, %c0_i32 : i32
    %c0_i32_0 = arith.constant 0 : i32
    %c0_i32_1 = arith.constant 0 : i32
    return %2, %c0_i32_0 : i32, i32
  }
  func.func @transform_1(%arg0: i32, %arg1: i32) -> (i32, i32) {
    %c1_i32 = arith.constant 1 : i32
    %0 = arith.muli %arg0, %c1_i32 : i32
    %1 = arith.addi %0, %arg1 : i32
    %c0_i32 = arith.constant 0 : i32
    %2 = arith.minsi %1, %c0_i32 : i32
    %c0_i32_0 = arith.constant 0 : i32
    %c0_i32_1 = arith.constant 0 : i32
    return %2, %c0_i32_0 : i32, i32
  }
  func.func @transform_2(%arg0: i32, %arg1: i32) -> (i32, i32, i32) {
    %c0_i32 = arith.constant 0 : i32
    %c0_i32_0 = arith.constant 0 : i32
    %c0_i32_1 = arith.constant 0 : i32
    return %arg0, %c0_i32, %c0_i32_0 : i32, i32, i32
  }
}

</mosaic_0001>

<bundles_post_ra>
// kernel: tpu_custom_call.1
= control target key start
LH: loop header
LB: loop body
LE: loop exit
PB: predicated region body
PF: predicated region fallthrough
CT: control target
= control target key end

     0   :  { %vm73_vm0 = vcmask 261120   ;;  %s240_s0 = inlined_call_operand.vmem [shape: f32[8,32], index: 0, kind: input, shape index: {}]   ;;  %s241_s1 = inlined_call_operand.vmem [shape: s32[8,1], index: 1, kind: input, shape index: {}]   ;;  %s242_s2 = inlined_call_operand.hbm [shape: f32[1,8,128], index: 2, kind: output, shape index: {}]  }
   0x1   :  { %v71_v0 = vld [vmem:[%s240_s0] sm:$0xff] }
   0x2   :  { %7 = vsyncpa [#allocation3], 0  ;;  %v74_v1 = vsel %vm73_vm0, %v71_v0, -inf  ;;  %v210_v2 = vmov 0   ;;  %v72_v3 = vld [vmem:[%s241_s1] sm:$0xff]  ;;  %v89_v9 = vlaneseq  ;;  %v86_v11 = vsel %vm73_vm0, %v71_v0, 0.0 }
   0x3   :  { %179 = vset.pattern.permute.xlu0 %v210_v2  ;;  %vm109_vm2 = vcmask 7168   ;;  %s211_s13 = smov [#allocation2]   ;;  %s151_s17 = sshll.u32 %s242_s2, 4  ;;  %s152_s17 = int_to_ptr.hbm [resolvable:$true] %s151_s17 }
   0x4   :  { %75 = vmax.xlane.f32.xlu0 %v74_v1  ;;  %v90_v10 = vand.u32 127, %v89_v9  ;;  %v102_v40 = vshrl.u32 %v89_v9, 7  ;;  %s149_s14 = sshll.u32 %s211_s13, 4  ;;  %s150_s14 = int_to_ptr.vmem [resolvable:$true] %s149_s14 }
   0x6   :  { %vm132_vm3 = vcmp.eq.s32.totalorder %v102_v40, 0  ;;  %vm135_vm4 = vcmp.eq.s32.totalorder %v90_v10, 1  ;;  %vm133_vm5 = vcmp.eq.s32.totalorder %v90_v10, 0 }
   0x7   :  { %vm136_vm6 = vmand %vm132_vm3, %vm135_vm4 }
   0x8   :  { %vm134_vm7 = vmand %vm132_vm3, %vm133_vm5 }
  0x18   :  { %92 = vperm.xlu0 %179, %v72_v3  }
  0x77   :  { %v76_v4 = vpop.xlane.xlu0 %75 }
  0x78   :  { %v77_v5 = vsub.f32 %v71_v0, %v76_v4 }
  0x7a   :  { %v78_v6 = vmul.f32 1.442695, %v77_v5 }
  0x7c   :  { %180 = vpow2.f32 %v78_v6 }
  0x82   :  { %v181_v7 = vpop.eup %180 }
  0x83   :  { %v80_v8 = vsel %vm73_vm0, %v181_v7, 0.0 }
  0x84   :  { %81 = vadd.xlane.f32.xlu1 %v80_v8 }
  0x8a   :  { %v93_v12 = vpop.permute.xlu0 %92 }
  0x8b   :  { %vm94_vm1 = vcmp.eq.s32.totalorder %v90_v10, %v93_v12 }
  0x8c   :  { %v95_v13 = vsel %vm94_vm1, %v71_v0, 0.0  ;;  %87 = vadd.xlane.f32.xlu1 %v86_v11 }
  0x8d   :  { %v96_v14 = vsel %vm73_vm0, %v95_v13, 0.0 }
  0x8e   :  { %97 = vadd.xlane.f32.xlu2 %v96_v14 }
  0xf7   :  { %v82_v15 = vpop.xlane.xlu1 %81 }
  0xf8   :  { %182 = vlog2.f32 %v82_v15 }
  0xfe   :  { %v183_v16 = vpop.eup %182 }
  0xff   :  { %v84_v17 = vmul.f32 0.6931472, %v183_v16  ;;  %v88_v20 = vpop.xlane.xlu1 %87 }
 0x101   :  { %v85_v18 = vadd.f32 %v84_v17, %v76_v4  ;;  %v98_v19 = vpop.xlane.xlu2 %97 }
 0x103   :  { %v120_v21 = vsub.f32 %v85_v18, %v98_v19  ;;  %v106_v22 = vmul.f32 32.0, %v85_v18 }
 0x105   :  { %v107_v23 = vsub.f32 %v106_v22, %v88_v20  ;;  %v122_v24 = vsel %vm109_vm2, %v120_v21, 0.0 }
 0x106   :  { %123 = vadd.xlane.f32.xlu1 %v122_v24 }
 0x107   :  { %v110_v25 = vsel %vm109_vm2, %v107_v23, 0.0 }
 0x108   :  { %111 = vadd.xlane.f32.xlu2 %v110_v25 }
 0x179   :  { %v124_v26 = vpop.xlane.xlu1 %123 }
 0x17a   :  { %v125_v27 = vrot.slane %v124_v26, 4 }
 0x17b   :  { %v112_v28 = vpop.xlane.xlu2 %111 }
 0x17c   :  { %v126_v29 = vadd.f32 %v125_v27, %v124_v26  ;;  %v113_v30 = vrot.slane %v112_v28, 4 }
 0x17e   :  { %v127_v31 = vrot.slane %v126_v29, 2  ;;  %v114_v32 = vadd.f32 %v113_v30, %v112_v28 }
 0x180   :  { %v128_v33 = vadd.f32 %v127_v31, %v126_v29  ;;  %v115_v34 = vrot.slane %v114_v32, 2 }
 0x182   :  { %v116_v35 = vadd.f32 %v115_v34, %v114_v32  ;;  %v129_v36 = vrot.slane %v128_v33, 1 }
 0x184   :  { %v117_v37 = vrot.slane %v116_v35, 1  ;;  %v130_v39 = vadd.f32 %v129_v36, %v128_v33 }
 0x186   :  { %v118_v38 = vadd.f32 %v117_v37, %v116_v35 }
 0x188   :  { %172 = vpush %v118_v38 }
 0x189   :  { %174 = vpush %v130_v39 }
 0x1b9   :  { %s173_s0 = spop %172 }
 0x1ba   :  { %v139_v41 = vstv %s173_s0  ;;  %s175_s1 = spop %174 }
 0x1bb   :  { %v137_v42 = vstv %s175_s1 }
 0x1bc   :  { %v138_v43 = vsel %vm136_vm6, %v137_v42, 0.0 }
 0x1bd   :  { %v140_v44 = vsel %vm134_vm7, %v139_v41, %v138_v43 }
 0x1be   :  { %143 = vst [vmem:[#allocation2] sm:$0xff] %v140_v44 }
 0x1bf   :  { %154 = dma.vmem_to_hbm [thread:$0]  %s150_s14, 128, %s152_s17, [#allocation3]  }
 0x1c0   :  { %208 = dma.done.wait [#allocation3], 128  }
 0x1c1   :  { %209 = vsyncadd [#allocation3], 4294967168 }
 0x1c2   :  { %159 = vsyncpa [#allocation3], 1 }

</bundles_post_ra>
